<compile_context>
chip_gen: v6e
topology: v6e:2x2x1
jax: 0.10.0
libtpu: 0.0.40
codegen_flags: <defaults>
</compile_context>

<pallas_src>
import functools

import jax
import jax.numpy as jnp
from jax import lax
from jax.experimental import pallas as pl
from jax.experimental.pallas import tpu as pltpu

ALPHA = 0.5
BETA = 0.5          # unused in the reference forward (kept for parity)
CE_RATIO = 0.5
EPS = 1e-10

LANES = 128
SUBLANES = 8
MAX_TILE_ROWS = 2048   # 2048 x 128 f32 = 1 MiB per input block


def _combo_kernel(x_ref, t_ref, o_ref, inter_ref, sum_ref, ce_ref,
                  *, n_elems, tile_rows, smooth, masked, binary_targets):
    i = pl.program_id(0)
    nsteps = pl.num_programs(0)

    @pl.when(i == 0)
    def _init():
        inter_ref[...] = jnp.zeros_like(inter_ref)
        sum_ref[...] = jnp.zeros_like(sum_ref)
        ce_ref[...] = jnp.zeros_like(ce_ref)

    # Stream in native dtype; upcast in-register.
    x = x_ref[...].astype(jnp.float32)
    t = t_ref[...].astype(jnp.float32)

    prod = x * t                       # -> sum(x * t)
    ssum = x + t                       # -> sum(x) + sum(t)

    xc = jnp.clip(x, EPS, 1.0 - EPS)
    if binary_targets:
        # One log/element; exact for hard {0,1} targets only.
        is_pos = t > 0.5
        arg = jnp.where(is_pos, xc, 1.0 - xc)
        w = jnp.where(is_pos, 1.0, 1.0 - ALPHA)
        ce = w * jnp.log(arg)
    else:
        # Exact reproduction of the PyTorch expression, factored to save VPU ops:
        # t*l1 + (1-t)*l2  ==  l2 + t*(l1 - l2).  ALPHA (which multiplies the
        # whole bracket, including the (1-ALPHA) term, exactly as written in the
        # module) and the leading minus are applied once in the finalize branch.
        l1 = jnp.log(xc)
        l2 = (1.0 - ALPHA) * jnp.log(1.0 - xc)
        ce = l2 + t * (l1 - l2)

    def _vreg_reduce(v):
        # (tile_rows, LANES) -> (8, LANES): pure VPU adds over resident vregs
        # (sublane-axis split; no (8,128) tile boundary crossed, no XLU work).
        return jnp.sum(v.reshape(tile_rows // SUBLANES, SUBLANES, LANES), axis=0)

    def _accumulate(p, s, c):
        inter_ref[...] += _vreg_reduce(p)
        sum_ref[...] += _vreg_reduce(s)
        ce_ref[...] += _vreg_reduce(c)

    if masked:
        @pl.when(i < nsteps - 1)
        def _body():
            _accumulate(prod, ssum, ce)

        @pl.when(i == nsteps - 1)
        def _tail():
            # Only the last tile can hold padded / out-of-range elements, so the
            # iota+compare+select cost is paid on this step alone.
            row_ids = lax.broadcasted_iota(jnp.int32, (tile_rows, LANES), 0)
            lane_ids = lax.broadcasted_iota(jnp.int32, (tile_rows, LANES), 1)
            flat = (i * tile_rows + row_ids) * LANES + lane_ids   # ok up to 2^31 elems
            valid = flat < n_elems
            _accumulate(jnp.where(valid, prod, 0.0),
                        jnp.where(valid, ssum, 0.0),
                        jnp.where(valid, ce, 0.0))
    else:
        _accumulate(prod, ssum, ce)

    @pl.when(i == nsteps - 1)
    def _finalize():
        intersection = jnp.sum(inter_ref[...])
        denom = jnp.sum(sum_ref[...])
        dice = (2.0 * intersection + smooth) / (denom + smooth)
        weighted_ce = -(ALPHA * jnp.sum(ce_ref[...])) / n_elems
        o_ref[0, 0] = CE_RATIO * weighted_ce - (1.0 - CE_RATIO) * dice


def combo_loss(inputs, targets, smooth=1.0, binary_targets=False):
    # Keep native floating dtypes (bf16 halves HBM traffic); only non-float
    # targets (bool / int masks) are cast once in the wrapper.
    x = jnp.reshape(inputs, (-1,))
    t = jnp.reshape(targets, (-1,))
    if not jnp.issubdtype(x.dtype, jnp.floating):
        x = x.astype(jnp.float32)
    if not jnp.issubdtype(t.dtype, jnp.floating):
        t = t.astype(jnp.float32)

    n = x.shape[0]

    # Pad only to the next multiple of 8*128 = 1024 elements (<= 1023 zeros) so
    # the flat array reshapes to (rows, 128) with rows a sublane multiple.
    # Padding to a tile multiple is NOT required: the kernel masks the last tile.
    pad = (-n) % (SUBLANES * LANES)
    if pad:
        x = jnp.pad(x, (0, pad))
        t = jnp.pad(t, (0, pad))
    rows = (n + pad) // LANES

    tile_rows = min(rows, MAX_TILE_ROWS)
    num_steps = -(-rows // tile_rows)              # cdiv
    covered = num_steps * tile_rows * LANES
    masked = covered != n                          # last tile has invalid elems

    x2 = x.reshape(rows, LANES)
    t2 = t.reshape(rows, LANES)

    kernel = functools.partial(
        _combo_kernel,
        n_elems=n,
        tile_rows=tile_rows,
        smooth=float(smooth),
        masked=masked,
        binary_targets=binary_targets,
    )

    out = pl.pallas_call(
        kernel,
        out_shape=jax.ShapeDtypeStruct((1, 1), jnp.float32),
        grid_spec=pltpu.PrefetchScalarGridSpec(
            num_scalar_prefetch=0,
            grid=(num_steps,),
            in_specs=[
                pl.BlockSpec((tile_rows, LANES), lambda i: (i, 0)),
                pl.BlockSpec((tile_rows, LANES), lambda i: (i, 0)),
            ],
            out_specs=pl.BlockSpec(
                (1, 1), lambda i: (0, 0), memory_space=pltpu.SMEM
            ),
            scratch_shapes=[
                pltpu.VMEM((SUBLANES, LANES), jnp.float32),  # sum(x*t) partials
                pltpu.VMEM((SUBLANES, LANES), jnp.float32),  # sum(x+t) partials
                pltpu.VMEM((SUBLANES, LANES), jnp.float32),  # CE partials
            ],
        ),
        compiler_params=pltpu.CompilerParams(
            dimension_semantics=("arbitrary",)
        ),
    )(x2, t2)
    return out[0, 0]


def combo_loss_ref(inputs, targets, smooth=1.0):
    x = jnp.reshape(inputs, (-1,)).astype(jnp.float32)
    t = jnp.reshape(targets, (-1,)).astype(jnp.float32)
    intersection = jnp.sum(x * t)
    dice = (2.0 * intersection + smooth) / (jnp.sum(x) + jnp.sum(t) + smooth)
    xc = jnp.clip(x, EPS, 1.0 - EPS)
    out = -(ALPHA * (t * jnp.log(xc) + (1.0 - ALPHA) * (1.0 - t) * jnp.log(1.0 - xc)))
    weighted_ce = jnp.mean(out)
    return CE_RATIO * weighted_ce - (1.0 - CE_RATIO) * dice


if __name__ == "__main__":
    key = jax.random.PRNGKey(0)
    k1, k2, k3, k4, k5, k6 = jax.random.split(key, 6)

    # Case 1: tile-aligned f32 NCHW input (post-sigmoid preds, binary targets).
    B, C, H, W = 2, 4, 16, 16
    inputs = jax.nn.sigmoid(jax.random.normal(k1, (B, C, H, W), jnp.float32))
    targets = (jax.random.uniform(k2, (B, C, H, W)) > 0.5).astype(jnp.float32)
    loss = jax.block_until_ready(combo_loss(inputs, targets))
    ref = jax.block_until_ready(combo_loss_ref(inputs, targets))
    assert jnp.allclose(loss, ref, atol=1e-5, rtol=1e-5), (loss, ref)
    # Same case through the one-log binary-target fast path (exact for {0,1}).
    loss_b = jax.block_until_ready(combo_loss(inputs, targets, binary_targets=True))
    assert jnp.allclose(loss_b, ref, atol=1e-5, rtol=1e-5), (loss_b, ref)

    # Case 2: non-128-aligned shape -> minimal pad + last-tile mask path.
    B2, C2, H2, W2 = 2, 3, 15, 17
    inputs2 = jax.nn.sigmoid(jax.random.normal(k3, (B2, C2, H2, W2), jnp.float32))
    targets2 = (jax.random.uniform(k4, (B2, C2, H2, W2)) > 0.5).astype(jnp.float32)
    loss2 = jax.block_until_ready(combo_loss(inputs2, targets2))
    ref2 = jax.block_until_ready(combo_loss_ref(inputs2, targets2))
    assert jnp.allclose(loss2, ref2, atol=1e-5, rtol=1e-5), (loss2, ref2)

    # Case 3: bf16 streaming + multi-step grid with a partial (masked) last tile.
    B3, C3, H3, W3 = 2, 4, 240, 160   # 307200 elems -> 2400 rows -> 2 grid steps
    inputs3 = jax.nn.sigmoid(
        jax.random.normal(k5, (B3, C3, H3, W3), jnp.float32)).astype(jnp.bfloat16)
    targets3 = (jax.random.uniform(k6, (B3, C3, H3, W3)) > 0.5).astype(jnp.bfloat16)
    loss3 = jax.block_until_ready(combo_loss(inputs3, targets3))
    ref3 = jax.block_until_ready(combo_loss_ref(inputs3, targets3))
    assert jnp.allclose(loss3, ref3, atol=2e-4, rtol=2e-4), (loss3, ref3)

    print("KERNEL_OK")
</pallas_src>

<mosaic_0001>
module attributes {stable_mosaic.version = 11 : i64} {
  func.func @_combo_kernel(%arg0: i32, %arg1: memref<16x128xf32, #tpu.memory_space<vmem>>, %arg2: memref<16x128xf32, #tpu.memory_space<vmem>>, %arg3: memref<1x1xf32, #tpu.memory_space<smem>>, %arg4: memref<8x128xf32, #tpu.memory_space<vmem>>, %arg5: memref<8x128xf32, #tpu.memory_space<vmem>>, %arg6: memref<8x128xf32, #tpu.memory_space<vmem>>) attributes {dimension_semantics = [#tpu.dimension_semantics<arbitrary>], iteration_bounds = array<i64: 1>, scalar_prefetch = 0 : i64, scratch_operands = 3 : i64, tpu.core_type = #tpu.core_type<tc>, window_params = [{transform_indices = @transform_0, window_bounds = array<i64: 16, 128>}, {transform_indices = @transform_1, window_bounds = array<i64: 16, 128>}, {transform_indices = @transform_2, window_bounds = array<i64: 1, 1>}]} {
    %c0_i32 = arith.constant 0 : i32
    %0 = arith.cmpi eq, %arg0, %c0_i32 : i32
    %1 = arith.extui %0 : i1 to i32
    %c0_i32_0 = arith.constant 0 : i32
    %2 = arith.cmpi ne, %1, %c0_i32_0 : i32
    scf.if %2 {
      %cst_24 = arith.constant 0.000000e+00 : f32
      %38 = vector.broadcast %cst_24 : f32 to vector<8x128xf32>
      %c0_25 = arith.constant 0 : index
      %c0_26 = arith.constant 0 : index
      %39 = vector.load %arg4[%c0_25, %c0_26] : memref<8x128xf32, #tpu.memory_space<vmem>>, vector<8x128xf32>
      tpu.vector_store %arg4[%c0_25, %c0_26], %38 {strides = array<i32>} : memref<8x128xf32, #tpu.memory_space<vmem>>, vector<8x128xf32>,
      %cst_27 = arith.constant 0.000000e+00 : f32
      %40 = vector.broadcast %cst_27 : f32 to vector<8x128xf32>
      %c0_28 = arith.constant 0 : index
      %c0_29 = arith.constant 0 : index
      %41 = vector.load %arg5[%c0_28, %c0_29] : memref<8x128xf32, #tpu.memory_space<vmem>>, vector<8x128xf32>
      tpu.vector_store %arg5[%c0_28, %c0_29], %40 {strides = array<i32>} : memref<8x128xf32, #tpu.memory_space<vmem>>, vector<8x128xf32>,
      %cst_30 = arith.constant 0.000000e+00 : f32
      %42 = vector.broadcast %cst_30 : f32 to vector<8x128xf32>
      %c0_31 = arith.constant 0 : index
      %c0_32 = arith.constant 0 : index
      %43 = vector.load %arg6[%c0_31, %c0_32] : memref<8x128xf32, #tpu.memory_space<vmem>>, vector<8x128xf32>
      tpu.vector_store %arg6[%c0_31, %c0_32], %42 {strides = array<i32>} : memref<8x128xf32, #tpu.memory_space<vmem>>, vector<8x128xf32>,
    } else {
    }
    %c0 = arith.constant 0 : index
    %c0_1 = arith.constant 0 : index
    %3 = vector.load %arg1[%c0, %c0_1] : memref<16x128xf32, #tpu.memory_space<vmem>>, vector<16x128xf32>
    %c0_2 = arith.constant 0 : index
    %c0_3 = arith.constant 0 : index
    %4 = vector.load %arg2[%c0_2, %c0_3] : memref<16x128xf32, #tpu.memory_space<vmem>>, vector<16x128xf32>
    %5 = arith.mulf %3, %4 : vector<16x128xf32>
    %6 = arith.addf %3, %4 : vector<16x128xf32>
    %cst = arith.constant 1.000000e-10 : f32
    %cst_4 = arith.constant 1.000000e+00 : f32
    %7 = vector.broadcast %cst : f32 to vector<16x128xf32>
    %8 = arith.maximumf %7, %3 : vector<16x128xf32>
    %9 = vector.broadcast %cst_4 : f32 to vector<16x128xf32>
    %10 = arith.minimumf %9, %8 : vector<16x128xf32>
    %11 = math.log %10 : vector<16x128xf32>
    %cst_5 = arith.constant 1.000000e+00 : f32
    %12 = vector.broadcast %cst_5 : f32 to vector<16x128xf32>
    %13 = arith.subf %12, %10 : vector<16x128xf32>
    %14 = math.log %13 : vector<16x128xf32>
    %cst_6 = arith.constant 5.000000e-01 : f32
    %15 = vector.broadcast %cst_6 : f32 to vector<16x128xf32>
    %16 = arith.mulf %15, %14 : vector<16x128xf32>
    %17 = arith.subf %11, %16 : vector<16x128xf32>
    %18 = arith.mulf %4, %17 : vector<16x128xf32>
    %19 = arith.addf %16, %18 : vector<16x128xf32>
    %c0_7 = arith.constant 0 : index
    %c0_8 = arith.constant 0 : index
    %20 = vector.load %arg4[%c0_7, %c0_8] : memref<8x128xf32, #tpu.memory_space<vmem>>, vector<8x128xf32>
    %21 = vector.shape_cast %5 : vector<16x128xf32> to vector<2x8x128xf32>
    %cst_9 = arith.constant dense<0.000000e+00> : vector<8x128xf32>
    %22 = vector.multi_reduction <add>, %21, %cst_9 [0] : vector<2x8x128xf32> to vector<8x128xf32>
    %23 = arith.addf %20, %22 : vector<8x128xf32>
    %c0_10 = arith.constant 0 : index
    %c0_11 = arith.constant 0 : index
    %24 = vector.load %arg4[%c0_10, %c0_11] : memref<8x128xf32, #tpu.memory_space<vmem>>, vector<8x128xf32>
    tpu.vector_store %arg4[%c0_10, %c0_11], %23 {strides = array<i32>} : memref<8x128xf32, #tpu.memory_space<vmem>>, vector<8x128xf32>,
    %c0_12 = arith.constant 0 : index
    %c0_13 = arith.constant 0 : index
    %25 = vector.load %arg5[%c0_12, %c0_13] : memref<8x128xf32, #tpu.memory_space<vmem>>, vector<8x128xf32>
    %26 = vector.shape_cast %6 : vector<16x128xf32> to vector<2x8x128xf32>
    %cst_14 = arith.constant dense<0.000000e+00> : vector<8x128xf32>
    %27 = vector.multi_reduction <add>, %26, %cst_14 [0] : vector<2x8x128xf32> to vector<8x128xf32>
    %28 = arith.addf %25, %27 : vector<8x128xf32>
    %c0_15 = arith.constant 0 : index
    %c0_16 = arith.constant 0 : index
    %29 = vector.load %arg5[%c0_15, %c0_16] : memref<8x128xf32, #tpu.memory_space<vmem>>, vector<8x128xf32>
    tpu.vector_store %arg5[%c0_15, %c0_16], %28 {strides = array<i32>} : memref<8x128xf32, #tpu.memory_space<vmem>>, vector<8x128xf32>,
    %c0_17 = arith.constant 0 : index
    %c0_18 = arith.constant 0 : index
    %30 = vector.load %arg6[%c0_17, %c0_18] : memref<8x128xf32, #tpu.memory_space<vmem>>, vector<8x128xf32>
    %31 = vector.shape_cast %19 : vector<16x128xf32> to vector<2x8x128xf32>
    %cst_19 = arith.constant dense<0.000000e+00> : vector<8x128xf32>
    %32 = vector.multi_reduction <add>, %31, %cst_19 [0] : vector<2x8x128xf32> to vector<8x128xf32>
    %33 = arith.addf %30, %32 : vector<8x128xf32>
    %c0_20 = arith.constant 0 : index
    %c0_21 = arith.constant 0 : index
    %34 = vector.load %arg6[%c0_20, %c0_21] : memref<8x128xf32, #tpu.memory_space<vmem>>, vector<8x128xf32>
    tpu.vector_store %arg6[%c0_20, %c0_21], %33 {strides = array<i32>} : memref<8x128xf32, #tpu.memory_space<vmem>>, vector<8x128xf32>,
    %c0_i32_22 = arith.constant 0 : i32
    %35 = arith.cmpi eq, %arg0, %c0_i32_22 : i32
    %36 = arith.extui %35 : i1 to i32
    %c0_i32_23 = arith.constant 0 : i32
    %37 = arith.cmpi ne, %36, %c0_i32_23 : i32
    scf.if %37 {
      %c0_24 = arith.constant 0 : index
      %c0_25 = arith.constant 0 : index
      %38 = vector.load %arg4[%c0_24, %c0_25] : memref<8x128xf32, #tpu.memory_space<vmem>>, vector<8x128xf32>
      %39 = vector.shape_cast %38 : vector<8x128xf32> to vector<1x8x128xf32>
      %cst_26 = arith.constant dense<0.000000e+00> : vector<1xf32>
      %40 = vector.multi_reduction <add>, %39, %cst_26 [1, 2] : vector<1x8x128xf32> to vector<1xf32>
      %41 = vector.shape_cast %40 : vector<1xf32> to vector<1x1x1xf32>
      %42 = vector.extract %41[0, 0, 0] : f32 from vector<1x1x1xf32>
      %c0_27 = arith.constant 0 : index
      %c0_28 = arith.constant 0 : index
      %43 = vector.load %arg5[%c0_27, %c0_28] : memref<8x128xf32, #tpu.memory_space<vmem>>, vector<8x128xf32>
      %44 = vector.shape_cast %43 : vector<8x128xf32> to vector<1x8x128xf32>
      %cst_29 = arith.constant dense<0.000000e+00> : vector<1xf32>
      %45 = vector.multi_reduction <add>, %44, %cst_29 [1, 2] : vector<1x8x128xf32> to vector<1xf32>
      %46 = vector.shape_cast %45 : vector<1xf32> to vector<1x1x1xf32>
      %47 = vector.extract %46[0, 0, 0] : f32 from vector<1x1x1xf32>
      %cst_30 = arith.constant 2.000000e+00 : f32
      %48 = arith.mulf %cst_30, %42 : f32
      %cst_31 = arith.constant 1.000000e+00 : f32
      %49 = arith.addf %48, %cst_31 : f32
      %cst_32 = arith.constant 1.000000e+00 : f32
      %50 = arith.addf %47, %cst_32 : f32
      %51 = arith.divf %49, %50 : f32
      %c0_33 = arith.constant 0 : index
      %c0_34 = arith.constant 0 : index
      %52 = vector.load %arg6[%c0_33, %c0_34] : memref<8x128xf32, #tpu.memory_space<vmem>>, vector<8x128xf32>
      %53 = vector.shape_cast %52 : vector<8x128xf32> to vector<1x8x128xf32>
      %cst_35 = arith.constant dense<0.000000e+00> : vector<1xf32>
      %54 = vector.multi_reduction <add>, %53, %cst_35 [1, 2] : vector<1x8x128xf32> to vector<1xf32>
      %55 = vector.shape_cast %54 : vector<1xf32> to vector<1x1x1xf32>
      %56 = vector.extract %55[0, 0, 0] : f32 from vector<1x1x1xf32>
      %cst_36 = arith.constant 5.000000e-01 : f32
      %57 = arith.mulf %cst_36, %56 : f32
      %cst_37 = arith.constant 0.000000e+00 : f32
      %58 = arith.subf %cst_37, %57 : f32
      %cst_38 = arith.constant 2.048000e+03 : f32
      %59 = arith.divf %58, %cst_38 : f32
      %cst_39 = arith.constant 5.000000e-01 : f32
      %60 = arith.mulf %cst_39, %59 : f32
      %cst_40 = arith.constant 5.000000e-01 : f32
      %61 = arith.mulf %cst_40, %51 : f32
      %62 = arith.subf %60, %61 : f32
      %c0_41 = arith.constant 0 : index
      %c0_42 = arith.constant 0 : index
      %63 = memref.load %arg3[%c0_41, %c0_42] : memref<1x1xf32, #tpu.memory_space<smem>>
      memref.store %62, %arg3[%c0_41, %c0_42] : memref<1x1xf32, #tpu.memory_space<smem>>
    } else {
    }
    return
  }
  func.func @transform_0(%arg0: i32) -> (i32, i32) {
    %c0_i32 = arith.constant 0 : i32
    %c0_i32_0 = arith.constant 0 : i32
    return %arg0, %c0_i32 : i32, i32
  }
  func.func @transform_1(%arg0: i32) -> (i32, i32) {
    %c0_i32 = arith.constant 0 : i32
    %c0_i32_0 = arith.constant 0 : i32
    return %arg0, %c0_i32 : i32, i32
  }
  func.func @transform_2(%arg0: i32) -> (i32, i32) {
    %c0_i32 = arith.constant 0 : i32
    %c0_i32_0 = arith.constant 0 : i32
    %c0_i32_1 = arith.constant 0 : i32
    return %c0_i32, %c0_i32_0 : i32, i32
  }
}

</mosaic_0001>

<bundles_post_ra>
// kernel: tpu_custom_call.1
= control target key start
LH: loop header
LB: loop body
LE: loop exit
PB: predicated region body
PF: predicated region fallthrough
CT: control target
= control target key end

     0   :  { %7 = vsyncpa [#allocation6], 0  ;;  %s260_s0 = inlined_call_operand.hbm [shape: f32[16,128], index: 0, kind: input, shape index: {}]   ;;  %s261_s1 = inlined_call_operand.hbm [shape: f32[16,128], index: 1, kind: input, shape index: {}]   ;;  %s262_s2 = inlined_call_operand.hbm [shape: f32[1,1], index: 2, kind: output, shape index: {}]  }
   0x1   :  { %8 = vsyncpa [#allocation9], 0 }
   0x2   :  { %9 = vsyncpa [#allocation7], 0  ;;  %s231_s9 = smov [#allocation5]  }
   0x3   :  { %s15_s10 = sshll.u32 %s231_s9, 4  ;;  %s16_s10 = int_to_ptr.vmem [resolvable:$true] %s15_s10 }
   0x4   :  { %s185_s11 = scalar_lea.vmem %s16_s10, 256  ;;  %p190_p1 = scmp.lt.s32.totalorder %s16_s10, %s16_s10 }
   0x5   :  { %p186_p0 = scmp.ne.s32.totalorder %s16_s10, %s185_s11  ;;  %p191_p2 = scmp.lt.s32.totalorder %s185_s11, %s185_s11 }
   0x7   :  { %p192_p3 = por %p191_p2, %p190_p1 }
   0x9   :  { %p193_p4 = pnand %p192_p3, %p186_p0 }
   0xb   :  { %196 = shalt.err (!%p193_p4)
}
   0xc   :  { %s232_s12 = smov 128   ;;  %s233_s13 = smov 8  }
   0xd   :  { %21 = dma.hbm_to_vmem [thread:$0]  %s260_s0, 256, %s16_s10, [#allocation6], %s232_s12, %s232_s12, %s233_s13  }
   0xe   :  { %s234_s16 = smov [#allocation8]  }
   0xf   :  { %s27_s17 = sshll.u32 %s234_s16, 4  ;;  %s28_s17 = int_to_ptr.vmem [resolvable:$true] %s27_s17 }
  0x10   :  { %s205_s18 = scalar_lea.vmem %s28_s17, 256  ;;  %p210_p6 = scmp.lt.s32.totalorder %s28_s17, %s28_s17 }
  0x11   :  { %p206_p5 = scmp.ne.s32.totalorder %s28_s17, %s205_s18  ;;  %p211_p7 = scmp.lt.s32.totalorder %s205_s18, %s205_s18 }
  0x13   :  { %p212_p8 = por %p211_p7, %p210_p6 }
  0x15   :  { %p213_p9 = pnand %p212_p8, %p206_p5 }
  0x17   :  { %216 = shalt.err (!%p213_p9)
}
  0x18   :  { %33 = dma.hbm_to_vmem [thread:$0]  %s261_s1, 256, %s28_s17, [#allocation9], %s232_s12, %s232_s12, %s233_s13  }
  0x19   :  { %225 = dma.done.wait [#allocation6], 256  }
  0x1a   :  { %226 = vsyncadd [#allocation6], 4294967040 }
  0x1b   :  { %227 = dma.done.wait [#allocation9], 256  }
  0x1c   :  { %228 = vsyncadd [#allocation9], 4294967040  ;;  %v47_v0 = vld [vmem:[#allocation5] sm:$0xff]  ;;  %v48_v1 = vld [vmem:[#allocation5 + $0x8] sm:$0xff]  ;;  %s235_s5 = smov [#allocation10]  }
  0x1d   :  { %v49_v2 = vld [vmem:[#allocation8] sm:$0xff]  ;;  %v50_v3 = vld [vmem:[#allocation8 + $0x8] sm:$0xff]  ;;  %v55_v5 = vmax.f32 %v47_v0, 1e-10  ;;  %v56_v6 = vmax.f32 %v48_v1, 1e-10 }
  0x1e   :  { %v51_v4 = vmul.f32 %v49_v2, %v47_v0  ;;  %v52_v7 = vmul.f32 %v50_v3, %v48_v1  ;;  %v53_v8 = vadd.f32 %v49_v2, %v47_v0  ;;  %v54_v9 = vadd.f32 %v50_v3, %v48_v1 }
  0x1f   :  { %v57_v10 = vmin.f32 %v55_v5, 1.0  ;;  %v58_v11 = vmin.f32 %v56_v6, 1.0 }
  0x20   :  { %v78_v12 = vadd.f32 %v52_v7, %v51_v4  ;;  %v82_v15 = vadd.f32 %v54_v9, %v53_v8 }
  0x21   :  { %167 = vlog2.f32 %v57_v10  ;;  %v63_v13 = vsub.f32 1.0, %v57_v10  ;;  %v64_v14 = vsub.f32 1.0, %v58_v11 }
  0x22   :  { %169 = vlog2.f32 %v58_v11  ;;  %93 = vadd.xlane.f32.xlu0 %v78_v12 }
  0x23   :  { %171 = vlog2.f32 %v63_v13 }
  0x24   :  { %173 = vlog2.f32 %v64_v14 }
  0x26   :  { %103 = vadd.xlane.f32.xlu0 %v82_v15 }
  0x2e   :  { %v168_v16 = vpop.eup %167 }
  0x2f   :  { %v170_v17 = vpop.eup %169  ;;  %v60_v20 = vmul.f32 0.6931472, %v168_v16 }
  0x30   :  { %v172_v18 = vpop.eup %171  ;;  %v62_v22 = vmul.f32 0.6931472, %v170_v17 }
  0x31   :  { %v174_v19 = vpop.eup %173  ;;  %v66_v21 = vmul.f32 0.6931472, %v172_v18 }
  0x32   :  { %v68_v23 = vmul.f32 0.6931472, %v174_v19 }
  0x33   :  { %v69_v24 = vmul.f32 0.5, %v66_v21 }
  0x34   :  { %v70_v25 = vmul.f32 0.5, %v68_v23 }
  0x35   :  { %v71_v26 = vsub.f32 %v60_v20, %v69_v24 }
  0x36   :  { %v72_v27 = vsub.f32 %v62_v22, %v70_v25 }
  0x37   :  { %v73_v28 = vmul.f32 %v71_v26, %v49_v2 }
  0x38   :  { %v74_v29 = vmul.f32 %v72_v27, %v50_v3 }
  0x39   :  { %v75_v30 = vadd.f32 %v73_v28, %v69_v24 }
  0x3a   :  { %v76_v31 = vadd.f32 %v74_v29, %v70_v25 }
  0x3c   :  { %v86_v32 = vadd.f32 %v76_v31, %v75_v30 }
  0x3e   :  { %120 = vadd.xlane.f32.xlu1 %v86_v32 }
  0xab   :  { %v94_v33 = vpop.xlane.xlu0 %93 }
  0xac   :  { %v95_v34 = vrot.slane %v94_v33, 4 }
  0xae   :  { %v96_v35 = vadd.f32 %v95_v34, %v94_v33 }
  0xaf   :  { %v104_v36 = vpop.xlane.xlu0 %103 }
  0xb0   :  { %v97_v37 = vrot.slane %v96_v35, 2  ;;  %v105_v38 = vrot.slane %v104_v36, 4 }
  0xb2   :  { %v106_v39 = vadd.f32 %v105_v38, %v104_v36  ;;  %v98_v40 = vadd.f32 %v97_v37, %v96_v35 }
  0xb4   :  { %v107_v41 = vrot.slane %v106_v39, 2  ;;  %v99_v42 = vrot.slane %v98_v40, 1 }
  0xb6   :  { %v108_v43 = vadd.f32 %v107_v41, %v106_v39  ;;  %v100_v44 = vadd.f32 %v99_v42, %v98_v40 }
  0xb8   :  { %154 = vpush %v100_v44  ;;  %v109_v45 = vrot.slane %v108_v43, 1 }
  0xba   :  { %v110_v46 = vadd.f32 %v109_v45, %v108_v43 }
  0xbc   :  { %156 = vpush %v110_v46 }
  0xc7   :  { %v121_v47 = vpop.xlane.xlu1 %120 }
  0xc8   :  { %v122_v48 = vrot.slane %v121_v47, 4 }
  0xca   :  { %v123_v49 = vadd.f32 %v122_v48, %v121_v47 }
  0xcc   :  { %v124_v51 = vrot.slane %v123_v49, 2 }
  0xce   :  { %v125_v52 = vadd.f32 %v124_v51, %v123_v49 }
  0xd0   :  { %v126_v53 = vrot.slane %v125_v52, 1 }
  0xd2   :  { %v127_v55 = vadd.f32 %v126_v53, %v125_v52 }
  0xe9   :  { %s155_s0 = spop %154 }
  0xea   :  { %s112_s22 = smul.f32 2.0, %s155_s0 }
  0xec   :  { %s113_s24 = sadd.f32 1.0, %s112_s22 }
  0xed   :  { %s157_s1 = spop %156 }
  0xee   :  { %s114_s21 = sadd.f32 1.0, %s157_s1 }
  0xf0   :  { %v115_v50 = vstv %s114_s21 }
  0xf1   :  { %175 = vrcp.f32 %v115_v50 }
  0xfe   :  { %v176_v54 = vpop.eup %175 }
  0xff   :  { %158 = vpush %v176_v54 }
 0x100   :  { %160 = vpush %v127_v55 }
 0x130   :  { %s159_s23 = spop %158 }
 0x131   :  { %s161_s25 = spop %160  ;;  %s118_s27 = smul.f32 %s159_s23, %s113_s24 }
 0x132   :  { %s129_s26 = smul.f32 0.5, %s161_s25 }
 0x133   :  { %s135_s30 = smul.f32 0.5, %s118_s27 }
 0x134   :  { %s130_s28 = ssub.f32 0.0, %s129_s26 }
 0x136   :  { %s133_s29 = smul.f32 0.00048828125, %s130_s28 }
 0x138   :  { %s134_s3 = smul.f32 0.5, %s133_s29 }
 0x13a   :  { %s136_s4 = ssub.f32 %s134_s3, %s135_s30 }
 0x13c   :  { %138 = sst [smem:[#allocation10]] %s136_s4 }
 0x13d   :  { %146 = dma.smem_to_hbm %s235_s5, 16, %s262_s2, [#allocation7]  }
 0x13e   :  { %229 = dma.done.wait [#allocation7], 16  }
 0x13f   :  { %230 = vsyncadd [#allocation7], 4294967280 }
 0x140   :  { %150 = sfence }
 0x141   :  { %151 = vsyncpa [#allocation6], 1 }
 0x142   :  { %152 = vsyncpa [#allocation9], 1 }
 0x143   :  { %153 = vsyncpa [#allocation7], 1 }

</bundles_post_ra>
